<compile_context>
chip_gen: v7x
topology: tpu7x:2x2x1
jax: 0.10.0
libtpu: 0.0.40
codegen_flags: <defaults>
</compile_context>

<pallas_src>
import functools

import jax
import jax.numpy as jnp
from jax.experimental import pallas as pl
from jax.experimental.pallas import tpu as pltpu

LEAKY_SLOPE = 0.01   # torch.nn.LeakyReLU default negative_slope
BN_EPS = 1e-5        # torch.nn.BatchNorm1d default eps
FEAT_PAD = 128       # lane-dense padded feature width
NEG_BIG = -1e30      # softmax-mask padding value for the final bias


# ---------------------------------------------------------------------------
# Fused Pallas kernel: the entire NewGCNModel forward in one call.
# ---------------------------------------------------------------------------
def fused_gcn_kernel(x_ref, a_ref, w_ref, b_ref, o_ref, *,
                     num_layers, skip_connection):
    """x_ref: (N, 128) f32 padded node features.
    a_ref: (N, N) f32 normalized dense adjacency.
    w_ref: (n_mats, 128, 128) bf16 packed weight slab.
    b_ref: (n_mats, 128) f32 packed bias slab.
    o_ref: (N, 128) f32 lane-dense log-prob slab (cols >= num_classes garbage).
    """
    x = x_ref[...]                                  # (N, 128) f32
    a = a_ref[...].astype(jnp.bfloat16)             # hoisted cast, (N, N) bf16
    wi = 0
    for i in range(num_layers):
        last = (i == num_layers - 1)
        w1 = w_ref[wi]                              # (128, 128) bf16
        b1 = b_ref[pl.ds(wi, 1), :]                 # (1, 128) f32
        wg = w_ref[wi + 1]
        bg = b_ref[pl.ds(wi + 1, 1), :]

        # Linear (BN affine pre-folded into w1/b1); Dropout = identity (eval).
        h = jnp.dot(x.astype(jnp.bfloat16), w1,
                    preferred_element_type=jnp.float32) + b1
        # LeakyReLU as a single vmax (valid for slope < 1).
        h = jnp.maximum(h, LEAKY_SLOPE * h)
        # GCNConv: A_norm @ (h @ Wg) + bg
        hw = jnp.dot(h.astype(jnp.bfloat16), wg,
                     preferred_element_type=jnp.float32)
        out = jnp.dot(a, hw.astype(jnp.bfloat16),
                      preferred_element_type=jnp.float32) + bg

        if not last:
            # Projection: Linear(hidden + num_layers, hidden) + Tanh, with the
            # one-hot layer label folded into the bias at param-prep time.
            wp = w_ref[wi + 2]
            bp = b_ref[pl.ds(wi + 2, 1), :]
            fx = jnp.tanh(jnp.dot(out.astype(jnp.bfloat16), wp,
                                  preferred_element_type=jnp.float32) + bp)
            x = fx + x if skip_connection else fx
            wi += 3
        else:
            # LogSoftmax(dim=1): lanes >= num_classes carry -1e30 from the
            # padded bias, so they lose the max and underflow to 0 in exp();
            # no iota / where masking needed.
            m = jnp.max(out, axis=1, keepdims=True)
            z = out - m
            lse = jnp.log(jnp.sum(jnp.exp(z), axis=1, keepdims=True))
            o_ref[...] = z - lse


def new_gcn_forward(packed, x, a_norm, *, skip_connection=False):
    """Run the fused forward.

    Returns the lane-dense (N, 128) padded log-prob slab; columns
    [num_classes:] are padding garbage — slice them off only if the consumer
    needs the narrow array.
    """
    num_layers = packed['num_layers']
    num_classes = packed['num_classes']
    hidden = packed['hidden']
    n, num_features = x.shape

    # One-time layout plumbing: present a lane-dense (N, 128) feature slab.
    x_pad = jnp.pad(x.astype(jnp.float32),
                    ((0, 0), (0, FEAT_PAD - num_features)))

    inputs = [x_pad, a_norm.astype(jnp.float32), packed['wslab'], packed['bslab']]

    # Advisory cost estimate using LOGICAL (un-padded) dims.
    flops = 0
    transcendentals = 0
    in_dim = num_features
    for i in range(num_layers):
        last_l = (i == num_layers - 1)
        out_dim = num_classes if last_l else hidden
        flops += 2 * n * in_dim * in_dim          # linear
        flops += 2 * n * in_dim * out_dim         # gcn weight
        flops += 2 * n * n * out_dim              # adjacency matmul
        if not last_l:
            flops += 2 * n * out_dim * out_dim    # projection
            transcendentals += n * out_dim        # tanh
        else:
            transcendentals += n * out_dim        # exp in log-softmax
        in_dim = hidden
    bytes_accessed = sum(int(a.size) * a.dtype.itemsize for a in inputs)
    bytes_accessed += n * FEAT_PAD * 4
    ce = pl.CostEstimate(flops=int(flops), transcendentals=int(transcendentals),
                         bytes_accessed=int(bytes_accessed))

    kern = functools.partial(fused_gcn_kernel, num_layers=num_layers,
                             skip_connection=skip_connection)
    out_pad = pl.pallas_call(
        kern,
        out_shape=jax.ShapeDtypeStruct((n, FEAT_PAD), jnp.float32),
        in_specs=[pl.BlockSpec(memory_space=pltpu.MemorySpace.VMEM)
                  for _ in inputs],
        out_specs=pl.BlockSpec(memory_space=pltpu.MemorySpace.VMEM),
        cost_estimate=ce,
    )(*inputs)
    return out_pad


# ---------------------------------------------------------------------------
# Glue (plain JAX): normalized adjacency, raw params, param packing, reference
# ---------------------------------------------------------------------------
def normalized_adjacency(edges, num_nodes):
    """edges: (E, 2) int array; model applies .T -> (2, E) with row=src, col=dst.
    Reproduces torch_geometric GCNConv gcn_norm: add self-loops, deg from
    scatter-add at target, A_norm[i, j] = d^-1/2[i] * d^-1/2[j] * A_hat[i, j].
    Computed ONCE per static graph (hoisted out of the forward)."""
    src = edges[:, 0]
    dst = edges[:, 1]
    a = jnp.zeros((num_nodes, num_nodes), jnp.float32).at[dst, src].add(1.0)
    a = a + jnp.eye(num_nodes, dtype=jnp.float32)       # self loops
    deg = jnp.sum(a, axis=1)
    dinv = jnp.where(deg > 0, 1.0 / jnp.sqrt(deg), 0.0)
    return dinv[:, None] * a * dinv[None, :]


def init_raw_params(key, num_features, num_classes, hidden, num_layers):
    """Raw (torch-like, JAX-orientation) parameters."""
    params = {'gcn': [], 'proj': []}
    in_dim, out_dim = num_features, hidden
    for i in range(num_layers):
        last = (i == num_layers - 1)
        if last:
            out_dim = num_classes
        key, k1, k2, k3, k4, k5, k6 = jax.random.split(key, 7)
        params['gcn'].append(dict(
            w1=0.2 * jax.random.normal(k1, (in_dim, in_dim), jnp.float32),
            b1=0.1 * jax.random.normal(k2, (1, in_dim), jnp.float32),
            gamma=1.0 + 0.1 * jax.random.normal(k3, (1, in_dim), jnp.float32),
            beta=0.1 * jax.random.normal(k4, (1, in_dim), jnp.float32),
            run_mean=jnp.zeros((1, in_dim), jnp.float32),   # BN default stats
            run_var=jnp.ones((1, in_dim), jnp.float32),
            wg=0.2 * jax.random.normal(k5, (in_dim, out_dim), jnp.float32),
            bg=0.1 * jax.random.normal(k6, (1, out_dim), jnp.float32)))
        if not last:
            key, kp1, kp2 = jax.random.split(key, 3)
            params['proj'].append(dict(
                wp=0.2 * jax.random.normal(
                    kp1, (out_dim + num_layers, out_dim), jnp.float32),
                bp=0.1 * jax.random.normal(kp2, (1, out_dim), jnp.float32)))
        in_dim, out_dim = hidden, hidden
    return params


def _pad_mat(w):
    r, c = w.shape
    return jnp.pad(w, ((0, FEAT_PAD - r), (0, FEAT_PAD - c)))


def _pad_bias(b, fill):
    c = b.shape[1]
    return jnp.pad(b, ((0, 0), (0, FEAT_PAD - c)), constant_values=fill)


def prepare_packed_params(raw, num_layers, num_classes, hidden, num_features):
    """Fold BN into Linear, fold the one-hot layer label into the projection
    bias, zero-pad every matrix/bias to 128 lanes/rows, and pack everything
    into ONE bf16 weight slab + ONE f32 bias slab (2 DMAs total for params).
    The final GCN bias is padded with -1e30 so the in-kernel log-softmax
    needs no explicit lane mask."""
    assert max(num_features, hidden, num_classes) <= FEAT_PAD
    weights, biases = [], []
    for i, p in enumerate(raw['gcn']):
        last = (i == num_layers - 1)
        scale = p['gamma'] / jnp.sqrt(p['run_var'] + BN_EPS)
        shift = p['beta'] - p['run_mean'] * scale
        w1f = p['w1'] * scale              # scale broadcasts over output columns
        b1f = p['b1'] * scale + shift
        weights.append(_pad_mat(w1f))
        biases.append(_pad_bias(b1f, 0.0))

        weights.append(_pad_mat(p['wg']))
        biases.append(_pad_bias(p['bg'], NEG_BIG if last else 0.0))

        if not last:
            pp = raw['proj'][i]
            wp_full = pp['wp']                       # (hidden + num_layers, hidden)
            wp = wp_full[:hidden]                    # feature block
            bp = pp['bp'] + wp_full[hidden + i][None, :]   # one-hot label row
            weights.append(_pad_mat(wp))
            biases.append(_pad_bias(bp, 0.0))

    wslab = jnp.stack(weights).astype(jnp.bfloat16)      # (n_mats, 128, 128)
    bslab = jnp.concatenate(biases, axis=0)              # (n_mats, 128) f32
    return dict(wslab=wslab, bslab=bslab, num_layers=num_layers,
                num_classes=num_classes, hidden=hidden)


def _reference_forward(raw, data, a_norm, *, skip_connection=False):
    """Pure-JAX reference (same math as the PyTorch module, eval mode)."""
    x = data['nodes']
    n = x.shape[0]
    num_layers = len(raw['gcn'])

    def layer(x, p, log_softmax):
        h = x @ p['w1'] + p['b1']
        scale = p['gamma'] / jnp.sqrt(p['run_var'] + BN_EPS)
        shift = p['beta'] - p['run_mean'] * scale
        h = h * scale + shift
        h = jnp.where(h >= 0.0, h, LEAKY_SLOPE * h)
        out = a_norm @ (h @ p['wg']) + p['bg']
        if log_softmax:
            out = jax.nn.log_softmax(out, axis=1)
        return out

    for i in range(num_layers - 1):
        fx = layer(x, raw['gcn'][i], False)
        label = jnp.zeros((n, num_layers), jnp.float32).at[:, i].set(1.0)
        fx = jnp.concatenate([fx, label], axis=1)
        pp = raw['proj'][i]
        fx = jnp.tanh(fx @ pp['wp'] + pp['bp'])
        x = fx + x if skip_connection else fx
    return layer(x, raw['gcn'][-1], True)


if __name__ == "__main__":
    num_features, num_classes, hidden, num_layers = 4, 3, 32, 3
    n_nodes = 16

    key = jax.random.PRNGKey(0)
    key, k_nodes = jax.random.split(key)
    nodes = jax.random.normal(k_nodes, (n_nodes, num_features), jnp.float32)
    # Deterministic bidirectional ring graph, edges stored as (E, 2) like the
    # torch model expects (it transposes internally).
    fwd = jnp.stack([jnp.arange(n_nodes), (jnp.arange(n_nodes) + 1) % n_nodes], 1)
    bwd = fwd[:, ::-1]
    edges = jnp.concatenate([fwd, bwd], axis=0).astype(jnp.int32)  # (32, 2)
    data = {'nodes': nodes, 'edges': edges}

    raw_params = init_raw_params(jax.random.PRNGKey(1), num_features,
                                 num_classes, hidden, num_layers)
    packed_params = prepare_packed_params(raw_params, num_layers, num_classes,
                                          hidden, num_features)

    # Static graph: build the normalized adjacency once, outside the forward.
    a_norm = normalized_adjacency(data['edges'], n_nodes)

    out_pad = new_gcn_forward(packed_params, data['nodes'], a_norm)
    out_pad = jax.block_until_ready(out_pad)
    out = out_pad[:, :num_classes]            # slice only for the comparison

    ref = jax.block_until_ready(_reference_forward(raw_params, data, a_norm))
    assert out.shape == (n_nodes, num_classes)
    assert bool(jnp.isfinite(out).all()), "non-finite output"
    # Kernel feeds bf16 operands to the MXU (per perf review); the pure-f32
    # reference therefore differs by O(1e-2) in the log-probs at worst.
    assert jnp.allclose(out, ref, atol=5e-2, rtol=5e-2), "mismatch vs reference"

    print("KERNEL_OK")
</pallas_src>

<mosaic_0001>
module attributes {stable_mosaic.version = 11 : i64} {
  func.func @fused_gcn_kernel(%arg0: memref<16x128xf32, #tpu.memory_space<vmem>>, %arg1: memref<16x16xf32, #tpu.memory_space<vmem>>, %arg2: memref<8x128x128xbf16, #tpu.memory_space<vmem>>, %arg3: memref<8x128xf32, #tpu.memory_space<vmem>>, %arg4: memref<16x128xf32, #tpu.memory_space<vmem>>) attributes {dimension_semantics = [], scalar_prefetch = 0 : i64, scratch_operands = 0 : i64, tpu.core_type = #tpu.core_type<tc>} {
    %c0 = arith.constant 0 : index
    %c0_0 = arith.constant 0 : index
    %0 = vector.load %arg0[%c0, %c0_0] : memref<16x128xf32, #tpu.memory_space<vmem>>, vector<16x128xf32>
    %c0_1 = arith.constant 0 : index
    %c0_2 = arith.constant 0 : index
    %1 = vector.load %arg1[%c0_1, %c0_2] : memref<16x16xf32, #tpu.memory_space<vmem>>, vector<16x16xf32>
    %2 = arith.truncf %1 : vector<16x16xf32> to vector<16x16xbf16>
    %c0_3 = arith.constant 0 : index
    %c0_4 = arith.constant 0 : index
    %c0_5 = arith.constant 0 : index
    %3 = vector.load %arg2[%c0_3, %c0_4, %c0_5] : memref<8x128x128xbf16, #tpu.memory_space<vmem>>, vector<1x128x128xbf16>
    %4 = vector.shape_cast %3 : vector<1x128x128xbf16> to vector<128x128xbf16>
    %c0_6 = arith.constant 0 : index
    %c0_7 = arith.constant 0 : index
    %5 = vector.load %arg3[%c0_6, %c0_7] : memref<8x128xf32, #tpu.memory_space<vmem>>, vector<1x128xf32>
    %c1 = arith.constant 1 : index
    %c0_8 = arith.constant 0 : index
    %c0_9 = arith.constant 0 : index
    %6 = vector.load %arg2[%c1, %c0_8, %c0_9] : memref<8x128x128xbf16, #tpu.memory_space<vmem>>, vector<1x128x128xbf16>
    %7 = vector.shape_cast %6 : vector<1x128x128xbf16> to vector<128x128xbf16>
    %c1_10 = arith.constant 1 : index
    %c0_11 = arith.constant 0 : index
    %8 = vector.load %arg3[%c1_10, %c0_11] : memref<8x128xf32, #tpu.memory_space<vmem>>, vector<1x128xf32>
    %9 = arith.truncf %0 : vector<16x128xf32> to vector<16x128xbf16>
    %cst = arith.constant dense<0.000000e+00> : vector<16x128xf32>
    %10 = tpu.matmul %9, %4, %cst {dimension_numbers = #tpu.dot_dimension_numbers<[1], [0], [0], [1], [0, 0, 1, 1], [], []>} : vector<16x128xbf16>, vector<128x128xbf16>, vector<16x128xf32> -> vector<16x128xf32>
    %11 = vector.broadcast %5 : vector<1x128xf32> to vector<16x128xf32>
    %12 = arith.addf %10, %11 : vector<16x128xf32>
    %cst_12 = arith.constant 0.00999999977 : f32
    %13 = vector.broadcast %cst_12 : f32 to vector<16x128xf32>
    %14 = arith.mulf %13, %12 : vector<16x128xf32>
    %15 = arith.maximumf %12, %14 : vector<16x128xf32>
    %16 = arith.truncf %15 : vector<16x128xf32> to vector<16x128xbf16>
    %cst_13 = arith.constant dense<0.000000e+00> : vector<16x128xf32>
    %17 = tpu.matmul %16, %7, %cst_13 {dimension_numbers = #tpu.dot_dimension_numbers<[1], [0], [0], [1], [0, 0, 1, 1], [], []>} : vector<16x128xbf16>, vector<128x128xbf16>, vector<16x128xf32> -> vector<16x128xf32>
    %18 = arith.truncf %17 : vector<16x128xf32> to vector<16x128xbf16>
    %cst_14 = arith.constant dense<0.000000e+00> : vector<16x128xf32>
    %19 = tpu.matmul %2, %18, %cst_14 {dimension_numbers = #tpu.dot_dimension_numbers<[1], [0], [0], [1], [0, 0, 1, 1], [], []>} : vector<16x16xbf16>, vector<16x128xbf16>, vector<16x128xf32> -> vector<16x128xf32>
    %20 = vector.broadcast %8 : vector<1x128xf32> to vector<16x128xf32>
    %21 = arith.addf %19, %20 : vector<16x128xf32>
    %c2 = arith.constant 2 : index
    %c0_15 = arith.constant 0 : index
    %c0_16 = arith.constant 0 : index
    %22 = vector.load %arg2[%c2, %c0_15, %c0_16] : memref<8x128x128xbf16, #tpu.memory_space<vmem>>, vector<1x128x128xbf16>
    %23 = vector.shape_cast %22 : vector<1x128x128xbf16> to vector<128x128xbf16>
    %c2_17 = arith.constant 2 : index
    %c0_18 = arith.constant 0 : index
    %24 = vector.load %arg3[%c2_17, %c0_18] : memref<8x128xf32, #tpu.memory_space<vmem>>, vector<1x128xf32>
    %25 = arith.truncf %21 : vector<16x128xf32> to vector<16x128xbf16>
    %cst_19 = arith.constant dense<0.000000e+00> : vector<16x128xf32>
    %26 = tpu.matmul %25, %23, %cst_19 {dimension_numbers = #tpu.dot_dimension_numbers<[1], [0], [0], [1], [0, 0, 1, 1], [], []>} : vector<16x128xbf16>, vector<128x128xbf16>, vector<16x128xf32> -> vector<16x128xf32>
    %27 = vector.broadcast %24 : vector<1x128xf32> to vector<16x128xf32>
    %28 = arith.addf %26, %27 : vector<16x128xf32>
    %29 = math.tanh %28 : vector<16x128xf32>
    %c3 = arith.constant 3 : index
    %c0_20 = arith.constant 0 : index
    %c0_21 = arith.constant 0 : index
    %30 = vector.load %arg2[%c3, %c0_20, %c0_21] : memref<8x128x128xbf16, #tpu.memory_space<vmem>>, vector<1x128x128xbf16>
    %31 = vector.shape_cast %30 : vector<1x128x128xbf16> to vector<128x128xbf16>
    %c3_22 = arith.constant 3 : index
    %c0_23 = arith.constant 0 : index
    %32 = vector.load %arg3[%c3_22, %c0_23] : memref<8x128xf32, #tpu.memory_space<vmem>>, vector<1x128xf32>
    %c4 = arith.constant 4 : index
    %c0_24 = arith.constant 0 : index
    %c0_25 = arith.constant 0 : index
    %33 = vector.load %arg2[%c4, %c0_24, %c0_25] : memref<8x128x128xbf16, #tpu.memory_space<vmem>>, vector<1x128x128xbf16>
    %34 = vector.shape_cast %33 : vector<1x128x128xbf16> to vector<128x128xbf16>
    %c4_26 = arith.constant 4 : index
    %c0_27 = arith.constant 0 : index
    %35 = vector.load %arg3[%c4_26, %c0_27] : memref<8x128xf32, #tpu.memory_space<vmem>>, vector<1x128xf32>
    %36 = arith.truncf %29 : vector<16x128xf32> to vector<16x128xbf16>
    %cst_28 = arith.constant dense<0.000000e+00> : vector<16x128xf32>
    %37 = tpu.matmul %36, %31, %cst_28 {dimension_numbers = #tpu.dot_dimension_numbers<[1], [0], [0], [1], [0, 0, 1, 1], [], []>} : vector<16x128xbf16>, vector<128x128xbf16>, vector<16x128xf32> -> vector<16x128xf32>
    %38 = vector.broadcast %32 : vector<1x128xf32> to vector<16x128xf32>
    %39 = arith.addf %37, %38 : vector<16x128xf32>
    %cst_29 = arith.constant 0.00999999977 : f32
    %40 = vector.broadcast %cst_29 : f32 to vector<16x128xf32>
    %41 = arith.mulf %40, %39 : vector<16x128xf32>
    %42 = arith.maximumf %39, %41 : vector<16x128xf32>
    %43 = arith.truncf %42 : vector<16x128xf32> to vector<16x128xbf16>
    %cst_30 = arith.constant dense<0.000000e+00> : vector<16x128xf32>
    %44 = tpu.matmul %43, %34, %cst_30 {dimension_numbers = #tpu.dot_dimension_numbers<[1], [0], [0], [1], [0, 0, 1, 1], [], []>} : vector<16x128xbf16>, vector<128x128xbf16>, vector<16x128xf32> -> vector<16x128xf32>
    %45 = arith.truncf %44 : vector<16x128xf32> to vector<16x128xbf16>
    %cst_31 = arith.constant dense<0.000000e+00> : vector<16x128xf32>
    %46 = tpu.matmul %2, %45, %cst_31 {dimension_numbers = #tpu.dot_dimension_numbers<[1], [0], [0], [1], [0, 0, 1, 1], [], []>} : vector<16x16xbf16>, vector<16x128xbf16>, vector<16x128xf32> -> vector<16x128xf32>
    %47 = vector.broadcast %35 : vector<1x128xf32> to vector<16x128xf32>
    %48 = arith.addf %46, %47 : vector<16x128xf32>
    %c5 = arith.constant 5 : index
    %c0_32 = arith.constant 0 : index
    %c0_33 = arith.constant 0 : index
    %49 = vector.load %arg2[%c5, %c0_32, %c0_33] : memref<8x128x128xbf16, #tpu.memory_space<vmem>>, vector<1x128x128xbf16>
    %50 = vector.shape_cast %49 : vector<1x128x128xbf16> to vector<128x128xbf16>
    %c5_34 = arith.constant 5 : index
    %c0_35 = arith.constant 0 : index
    %51 = vector.load %arg3[%c5_34, %c0_35] : memref<8x128xf32, #tpu.memory_space<vmem>>, vector<1x128xf32>
    %52 = arith.truncf %48 : vector<16x128xf32> to vector<16x128xbf16>
    %cst_36 = arith.constant dense<0.000000e+00> : vector<16x128xf32>
    %53 = tpu.matmul %52, %50, %cst_36 {dimension_numbers = #tpu.dot_dimension_numbers<[1], [0], [0], [1], [0, 0, 1, 1], [], []>} : vector<16x128xbf16>, vector<128x128xbf16>, vector<16x128xf32> -> vector<16x128xf32>
    %54 = vector.broadcast %51 : vector<1x128xf32> to vector<16x128xf32>
    %55 = arith.addf %53, %54 : vector<16x128xf32>
    %56 = math.tanh %55 : vector<16x128xf32>
    %c6 = arith.constant 6 : index
    %c0_37 = arith.constant 0 : index
    %c0_38 = arith.constant 0 : index
    %57 = vector.load %arg2[%c6, %c0_37, %c0_38] : memref<8x128x128xbf16, #tpu.memory_space<vmem>>, vector<1x128x128xbf16>
    %58 = vector.shape_cast %57 : vector<1x128x128xbf16> to vector<128x128xbf16>
    %c6_39 = arith.constant 6 : index
    %c0_40 = arith.constant 0 : index
    %59 = vector.load %arg3[%c6_39, %c0_40] : memref<8x128xf32, #tpu.memory_space<vmem>>, vector<1x128xf32>
    %c7 = arith.constant 7 : index
    %c0_41 = arith.constant 0 : index
    %c0_42 = arith.constant 0 : index
    %60 = vector.load %arg2[%c7, %c0_41, %c0_42] : memref<8x128x128xbf16, #tpu.memory_space<vmem>>, vector<1x128x128xbf16>
    %61 = vector.shape_cast %60 : vector<1x128x128xbf16> to vector<128x128xbf16>
    %c7_43 = arith.constant 7 : index
    %c0_44 = arith.constant 0 : index
    %62 = vector.load %arg3[%c7_43, %c0_44] : memref<8x128xf32, #tpu.memory_space<vmem>>, vector<1x128xf32>
    %63 = arith.truncf %56 : vector<16x128xf32> to vector<16x128xbf16>
    %cst_45 = arith.constant dense<0.000000e+00> : vector<16x128xf32>
    %64 = tpu.matmul %63, %58, %cst_45 {dimension_numbers = #tpu.dot_dimension_numbers<[1], [0], [0], [1], [0, 0, 1, 1], [], []>} : vector<16x128xbf16>, vector<128x128xbf16>, vector<16x128xf32> -> vector<16x128xf32>
    %65 = vector.broadcast %59 : vector<1x128xf32> to vector<16x128xf32>
    %66 = arith.addf %64, %65 : vector<16x128xf32>
    %cst_46 = arith.constant 0.00999999977 : f32
    %67 = vector.broadcast %cst_46 : f32 to vector<16x128xf32>
    %68 = arith.mulf %67, %66 : vector<16x128xf32>
    %69 = arith.maximumf %66, %68 : vector<16x128xf32>
    %70 = arith.truncf %69 : vector<16x128xf32> to vector<16x128xbf16>
    %cst_47 = arith.constant dense<0.000000e+00> : vector<16x128xf32>
    %71 = tpu.matmul %70, %61, %cst_47 {dimension_numbers = #tpu.dot_dimension_numbers<[1], [0], [0], [1], [0, 0, 1, 1], [], []>} : vector<16x128xbf16>, vector<128x128xbf16>, vector<16x128xf32> -> vector<16x128xf32>
    %72 = arith.truncf %71 : vector<16x128xf32> to vector<16x128xbf16>
    %cst_48 = arith.constant dense<0.000000e+00> : vector<16x128xf32>
    %73 = tpu.matmul %2, %72, %cst_48 {dimension_numbers = #tpu.dot_dimension_numbers<[1], [0], [0], [1], [0, 0, 1, 1], [], []>} : vector<16x16xbf16>, vector<16x128xbf16>, vector<16x128xf32> -> vector<16x128xf32>
    %74 = vector.broadcast %62 : vector<1x128xf32> to vector<16x128xf32>
    %75 = arith.addf %73, %74 : vector<16x128xf32>
    %cst_49 = arith.constant dense<0xFF800000> : vector<16xf32>
    %76 = vector.multi_reduction <maximumf>, %75, %cst_49 [1] : vector<16x128xf32> to vector<16xf32>
    %77 = vector.shape_cast %76 : vector<16xf32> to vector<16x1xf32>
    %78 = vector.broadcast %77 : vector<16x1xf32> to vector<16x128xf32>
    %79 = arith.subf %75, %78 : vector<16x128xf32>
    %80 = math.exp %79 : vector<16x128xf32>
    %cst_50 = arith.constant dense<0.000000e+00> : vector<16xf32>
    %81 = vector.multi_reduction <add>, %80, %cst_50 [1] : vector<16x128xf32> to vector<16xf32>
    %82 = vector.shape_cast %81 : vector<16xf32> to vector<16x1xf32>
    %83 = math.log %82 : vector<16x1xf32>
    %84 = vector.broadcast %83 : vector<16x1xf32> to vector<16x128xf32>
    %85 = arith.subf %79, %84 : vector<16x128xf32>
    %c0_51 = arith.constant 0 : index
    %c0_52 = arith.constant 0 : index
    %86 = vector.load %arg4[%c0_51, %c0_52] : memref<16x128xf32, #tpu.memory_space<vmem>>, vector<16x128xf32>
    tpu.vector_store %arg4[%c0_51, %c0_52], %85 {strides = array<i32>} : memref<16x128xf32, #tpu.memory_space<vmem>>, vector<16x128xf32>,
    return
  }
}

</mosaic_0001>

<bundles_post_ra>
// kernel: tpu_custom_call.1
= control target key start
LH: loop header
LB: loop body
LE: loop exit
PB: predicated region body
PF: predicated region fallthrough
CT: control target
= control target key end

     0   :  { %9 = vsyncpa [#allocation3], 0  ;;  %s1881_s0 = inlined_call_operand.hbm [shape: f32[16,128], index: 0, kind: input, shape index: {}]   ;;  %s1882_s1 = inlined_call_operand.hbm [shape: f32[16,16], index: 1, kind: input, shape index: {}]   ;;  %s1883_s2 = inlined_call_operand.hbm [shape: bf16[8,128,128], index: 2, kind: input, shape index: {}]   ;;  %s1884_s3 = inlined_call_operand.vmem [shape: f32[8,128], index: 3, kind: input, shape index: {}]   ;;  %s1885_s4 = inlined_call_operand.hbm [shape: f32[16,128], index: 4, kind: output, shape index: {}]  }
   0x1   :  { %10 = vsyncpa [#allocation6], 0 }
   0x2   :  { %11 = vsyncpa [#allocation4], 0  ;;  %s1661_s15 = smov [#allocation5]   ;;  %s1662_s17 = smov [#allocation2]  }
   0x3   :  { %s29_s16 = sshll.u32 %s1661_s15, 4  ;;  %s17_s18 = sshll.u32 %s1662_s17, 4  ;;  %s30_s16 = int_to_ptr.vmem [resolvable:$true] %s29_s16  ;;  %s1696_s18 = int_to_ptr.vmem [resolvable:$true] %s17_s18 }
   0x4   :  { %s1567_s21 = scalar_lea.hbm %s1882_s1, 256 }
   0x5   :  { %p1568_p0 = scmp.ne.s32.totalorder %s1882_s1, %s1567_s21  ;;  %p1571_p1 = scmp.lt.u32.totalorder %s1567_s21, %s1882_s1 }
   0x7   :  { %p1573_p2 = pnand %p1571_p1, %p1568_p0 }
   0x9   :  { %1576 = shalt.err (!%p1573_p2)
}
   0xa   :  { %s1577_s26 = scalar_lea.vmem %s30_s16, 256  ;;  %p1582_p4 = scmp.lt.s32.totalorder %s30_s16, %s30_s16 }
   0xb   :  { %p1578_p3 = scmp.ne.s32.totalorder %s30_s16, %s1577_s26  ;;  %p1583_p5 = scmp.lt.s32.totalorder %s1577_s26, %s1577_s26 }
   0xd   :  { %p1584_p6 = por %p1583_p5, %p1582_p4 }
   0xf   :  { %p1585_p7 = pnand %p1584_p6, %p1578_p3 }
  0x11   :  { %1588 = shalt.err (!%p1585_p7)
}
  0x12   :  { %s1663_s27 = smov 128   ;;  %s1664_s28 = smov 8  }
  0x13   :  { %35 = dma.hbm_to_vmem [thread:$0]  %s1882_s1, 256, %s30_s16, [#allocation6], %s1663_s27, %s1663_s27, %s1664_s28  }
  0x14   :  { %s1589_s7 = scalar_lea.hbm %s1881_s0, 256 }
  0x15   :  { %p1590_p8 = scmp.ne.s32.totalorder %s1881_s0, %s1589_s7  ;;  %p1593_p9 = scmp.lt.u32.totalorder %s1589_s7, %s1881_s0 }
  0x17   :  { %p1595_p10 = pnand %p1593_p9, %p1590_p8 }
  0x19   :  { %1598 = shalt.err (!%p1595_p10)
}
  0x1a   :  { %s1599_s12 = scalar_lea.vmem %s1696_s18, 256  ;;  %p1604_p12 = scmp.lt.s32.totalorder %s1696_s18, %s1696_s18 }
  0x1b   :  { %p1600_p11 = scmp.ne.s32.totalorder %s1696_s18, %s1599_s12  ;;  %p1605_p13 = scmp.lt.s32.totalorder %s1599_s12, %s1599_s12 }
  0x1d   :  { %p1606_p0 = por %p1605_p13, %p1604_p12 }
  0x1f   :  { %p1607_p1 = pnand %p1606_p0, %p1600_p11 }
  0x21   :  { %1610 = shalt.err (!%p1607_p1)
}
  0x22   :  { %23 = dma.hbm_to_vmem [thread:$0]  %s1881_s0, 256, %s1696_s18, [#allocation3], %s1663_s27, %s1663_s27, %s1664_s28  }
  0x23   :  { %s1665_s14 = smov [#allocation7]   ;;  %s1611_s19 = scalar_lea.hbm %s1883_s2, 8192 }
  0x24   :  { %s41_s15 = sshll.u32 %s1665_s14, 4  ;;  %p1612_p2 = scmp.ne.s32.totalorder %s1883_s2, %s1611_s19  ;;  %s42_s15 = int_to_ptr.vmem [resolvable:$true] %s41_s15 }
  0x25   :  { %p1615_p3 = scmp.lt.u32.totalorder %s1611_s19, %s1883_s2 }
  0x27   :  { %p1617_p4 = pnand %p1615_p3, %p1612_p2 }
  0x29   :  { %1620 = shalt.err (!%p1617_p4)
}
  0x2a   :  { %s1621_s24 = scalar_lea.vmem %s42_s15, 8192  ;;  %p1626_p6 = scmp.lt.s32.totalorder %s42_s15, %s42_s15 }
  0x2b   :  { %p1622_p5 = scmp.ne.s32.totalorder %s42_s15, %s1621_s24  ;;  %p1627_p7 = scmp.lt.s32.totalorder %s1621_s24, %s1621_s24 }
  0x2d   :  { %p1628_p8 = por %p1627_p7, %p1626_p6 }
  0x2f   :  { %p1629_p9 = pnand %p1628_p8, %p1622_p5 }
  0x31   :  { %1632 = shalt.err (!%p1629_p9)
}
  0x32   :  { %s1666_s0 = smov 64   ;;  %s1667_s18 = smov 4  }
  0x33   :  { %47 = dma.hbm_to_vmem [thread:$0]  %s1883_s2, 8192, %s42_s15, [#allocation6], %s1666_s0, %s1666_s0, %s1667_s18  }
  0x34   :  { %1655 = dma.done.wait [#allocation3], 256  }
  0x35   :  { %1656 = vsyncadd [#allocation3], 4294967040 }
  0x36   :  { %1657 = dma.done.wait [#allocation6], 8448  }
  0x37   :  { %1658 = vsyncadd [#allocation6], 4294958848  ;;  %v1668_v0 = vmov 0.0   ;;  %vm1669_vm0 = vmmov 0   ;;  %v1487_v1 = vld [vmem:[#allocation7] sm:$0xff]   ;;  %v1488_v2 = vld [vmem:[#allocation7 + $0x8] sm:$0xff]  }
  0x38   :  { %1299 = vmatprep.subr.bf16.mxu0 %v1668_v0  ;;  %1315 = vmatprep.mubr.msk.bf16.mxu0 %vm1669_vm0, %v1668_v0  ;;  %v1489_v3 = vld [vmem:[#allocation7 + $0x10] sm:$0xff]   ;;  %v1495_v4 = vld [vmem:[#allocation7 + $0x40] sm:$0xff]   ;;  %v1490_v5 = vld [vmem:[#allocation7 + $0x18] sm:$0xff]   ;;  %vm293_vm1 = vcmask 130048  }
  0x39   :  { %1319 = vmatprep.subr.bf16.mxu1 %v1668_v0  ;;  %1335 = vmatprep.mubr.msk.bf16.mxu1 %vm1669_vm0, %v1668_v0  ;;  %v1496_v6 = vld [vmem:[#allocation7 + $0x48] sm:$0xff]   ;;  %v1491_v7 = vld [vmem:[#allocation7 + $0x20] sm:$0xff]   ;;  %v1497_v8 = vld [vmem:[#allocation7 + $0x50] sm:$0xff]  }
  0x3a   :  { %1300 = vmatpush3.bf16.msra.mxu0 %v1487_v1  ;;  %1320 = vmatpush3.bf16.msra.mxu1 %v1495_v4  ;;  %v1492_v9 = vld [vmem:[#allocation7 + $0x28] sm:$0xff]   ;;  %v1498_v10 = vld [vmem:[#allocation7 + $0x58] sm:$0xff]   ;;  %v1493_v11 = vld [vmem:[#allocation7 + $0x30] sm:$0xff]  }
  0x3b   :  { %1301 = vmatprep.subr.bf16.mxu0 %v1668_v0  ;;  %1321 = vmatprep.subr.bf16.mxu1 %v1668_v0  ;;  %v1499_v12 = vld [vmem:[#allocation7 + $0x60] sm:$0xff]   ;;  %v1494_v13 = vld [vmem:[#allocation7 + $0x38] sm:$0xff]   ;;  %v61_v15 = vld [vmem:[#allocation2 + $0x8] sm:$0xff] }
  0x3c   :  { %v60_v14 = vld [vmem:[#allocation2] sm:$0xff]  ;;  %v1500_v17 = vld [vmem:[#allocation7 + $0x68] sm:$0xff]   ;;  %v1501_v18 = vld [vmem:[#allocation7 + $0x70] sm:$0xff]  }
  0x3d   :  { %v100_v16 = vpack.c.bf16 %v61_v15, %v60_v14  ;;  %v1502_v19 = vld [vmem:[#allocation7 + $0x78] sm:$0xff]   ;;  %v1146_v20 = vld [vmem:[%s1884_s3] ss:$0 sm:$0xff]  ;;  %v1504_v33 = vld [vmem:[#allocation7 + $0x88] sm:$0xff]  }
  0x3e   :  { %1302 = vmatpush3.bf16.msra.mxu0 %v1488_v2  ;;  %1322 = vmatpush3.bf16.msra.mxu1 %v1496_v6  ;;  %v1503_v32 = vld [vmem:[#allocation7 + $0x80] sm:$0xff]   ;;  %v1505_v34 = vld [vmem:[#allocation7 + $0x90] sm:$0xff]   ;;  %v1506_v35 = vld [vmem:[#allocation7 + $0x98] sm:$0xff]  }
  0x3f   :  { %1303 = vmatprep.subr.bf16.mxu0 %v1668_v0  ;;  %1323 = vmatprep.subr.bf16.mxu1 %v1668_v0  ;;  %v1507_v36 = vld [vmem:[#allocation7 + $0xa0] sm:$0xff]   ;;  %v1508_v37 = vld [vmem:[#allocation7 + $0xa8] sm:$0xff]   ;;  %v62_v40 = vld [vmem:[#allocation5] sm:$0xff] }
  0x40   :  { %v63_v41 = vld [vmem:[#allocation5 + $0x8] sm:$0xff]  ;;  %v1509_v46 = vld [vmem:[#allocation7 + $0xb0] sm:$0xff]   ;;  %v1511_v48 = vld [vmem:[#allocation7 + $0xc0] sm:$0xff]  }
  0x41   :  { %v1780_v45 = vpack.c.bf16 %v63_v41, %v62_v40  ;;  %v1510_v47 = vld [vmem:[#allocation7 + $0xb8] sm:$0xff]   ;;  %v1512_v49 = vld [vmem:[#allocation7 + $0xc8] sm:$0xff]   ;;  %v1513_v50 = vld [vmem:[#allocation7 + $0xd0] sm:$0xff]  }
  0x42   :  { %1304 = vmatpush3.bf16.msra.mxu0 %v1489_v3  ;;  %1324 = vmatpush3.bf16.msra.mxu1 %v1497_v8  ;;  %v1514_v51 = vld [vmem:[#allocation7 + $0xd8] sm:$0xff]   ;;  %v1163_v52 = vld [vmem:[%s1884_s3 + $0x1] ss:$0 sm:$0xff]  ;;  %v1516_v61 = vld [vmem:[#allocation7 + $0xe8] sm:$0xff]  }
  0x43   :  { %1305 = vmatprep.subr.bf16.mxu0 %v1668_v0  ;;  %1325 = vmatprep.subr.bf16.mxu1 %v1668_v0  ;;  %v1515_v60 = vld [vmem:[#allocation7 + $0xe0] sm:$0xff]   ;;  %v1517_v62 = vld [vmem:[#allocation7 + $0xf0] sm:$0xff]   ;;  %v1518_v63 = vld [vmem:[#allocation7 + $0xf8] sm:$0xff]  }
  0x44   :  { %v1519_v1 = vld [vmem:[#allocation7 + $0x100] sm:$0xff]   ;;  %v1520_v2 = vld [vmem:[#allocation7 + $0x108] sm:$0xff]   ;;  %v1521_v3 = vld [vmem:[#allocation7 + $0x110] sm:$0xff]  }
  0x45   :  { %v1522_v4 = vld [vmem:[#allocation7 + $0x118] sm:$0xff]   ;;  %v1165_v6 = vld [vmem:[%s1884_s3 + $0x2] ss:$0 sm:$0xff]  ;;  %v1532_v41 = vld [vmem:[#allocation7 + $0x168] sm:$0xff]  }
  0x46   :  { %1306 = vmatpush3.bf16.msra.mxu0 %v1490_v5  ;;  %1326 = vmatpush3.bf16.msra.mxu1 %v1498_v10  ;;  %v1523_v5 = vld [vmem:[#allocation7 + $0x120] sm:$0xff]  }
  0x47   :  { %1307 = vmatprep.subr.bf16.mxu0 %v1668_v0  ;;  %1327 = vmatprep.subr.bf16.mxu1 %v1668_v0  ;;  %v1531_v40 = vld [vmem:[#allocation7 + $0x160] sm:$0xff]  }
  0x4a   :  { %1308 = vmatpush3.bf16.msra.mxu0 %v1491_v7  ;;  %1328 = vmatpush3.bf16.msra.mxu1 %v1499_v12 }
  0x4b   :  { %1309 = vmatprep.subr.bf16.mxu0 %v1668_v0  ;;  %1329 = vmatprep.subr.bf16.mxu1 %v1668_v0 }
  0x4e   :  { %1310 = vmatpush3.bf16.msra.mxu0 %v1492_v9  ;;  %1330 = vmatpush3.bf16.msra.mxu1 %v1500_v17  ;;  %v1525_v17 = vld [vmem:[#allocation7 + $0x130] sm:$0xff]  }
  0x4f   :  { %1311 = vmatprep.subr.bf16.mxu0 %v1668_v0  ;;  %1331 = vmatprep.subr.bf16.mxu1 %v1668_v0 }
  0x52   :  { %1312 = vmatpush3.bf16.msra.mxu0 %v1493_v11  ;;  %1332 = vmatpush3.bf16.msra.mxu1 %v1501_v18  ;;  %v1526_v18 = vld [vmem:[#allocation7 + $0x138] sm:$0xff]  }
  0x53   :  { %1313 = vmatprep.subr.bf16.mxu0 %v1668_v0  ;;  %1333 = vmatprep.subr.bf16.mxu1 %v1668_v0 }
  0x56   :  { %1314 = vmatpush3.bf16.msra.mxu0 %v1494_v13  ;;  %1334 = vmatpush3.bf16.msra.mxu1 %v1502_v19  ;;  %v1174_v19 = vld [vmem:[%s1884_s3 + $0x3] ss:$0 sm:$0xff] }
  0x57   :  { %1339 = vmatprep.subr.bf16.mxu0 %v1668_v0  ;;  %1345 = vmatprep.subr.bf16.mxu1 %v1668_v0 }
  0x59   :  { %1316 = vmatmul.mubr.bf16.vlgmr.msra.gmra.mrb[0].mxu0 %v100_v16  ;;  %v1524_v16 = vld [vmem:[#allocation7 + $0x128] sm:$0xff]  }
  0x5a   :  { %1341 = vmatprep.mubr.msk.bf16.mxu0 %vm1669_vm0, %v1668_v0 }
 0x12c   :  { %v187_v21 = vpop.f32.mrb[0].mxu0 }
 0x12d   :  { %v188_v22 = vadd.f32 %v1146_v20, %v187_v21  ;;  %v1317_v23 = vpop.f32.mrb[1].mxu0 }
 0x12e   :  { %v190_v24 = vpop.f32.mrb[2].mxu0 }
 0x12f   :  { %v194_v25 = vmul.f32 0.01, %v188_v22  ;;  %v191_v26 = vadd.f32 %v1146_v20, %v190_v24  ;;  %v1318_v27 = vpop.f32.mrb[3].mxu0 }
 0x131   :  { %v195_v28 = vmul.f32 0.01, %v191_v26  ;;  %v196_v29 = vmax.f32 %v188_v22, %v194_v25 }
 0x133   :  { %v197_v30 = vmax.f32 %v191_v26, %v195_v28 }
 0x135   :  { %v198_v31 = vpack.c.bf16 %v197_v30, %v196_v29 }
 0x137   :  { %1336 = vmatmul.mubr.bf16.vlgmr.msra.gmra.mrb[0].mxu1 %v198_v31 }
 0x138   :  { %1361 = vmatprep.mubr.msk.bf16.mxu1 %vm1669_vm0, %v1668_v0  ;;  %1346 = vmatpush3.bf16.msra.mxu1 %v1503_v32 }
 0x139   :  { %1347 = vmatprep.subr.bf16.mxu1 %v1668_v0 }
 0x13c   :  { %1348 = vmatpush3.bf16.msra.mxu1 %v1504_v33 }
 0x13d   :  { %1349 = vmatprep.subr.bf16.mxu1 %v1668_v0 }
 0x140   :  { %1350 = vmatpush3.bf16.msra.mxu1 %v1505_v34 }
 0x141   :  { %1351 = vmatprep.subr.bf16.mxu1 %v1668_v0 }
 0x144   :  { %1352 = vmatpush3.bf16.msra.mxu1 %v1506_v35 }
 0x145   :  { %1353 = vmatprep.subr.bf16.mxu1 %v1668_v0 }
 0x148   :  { %1354 = vmatpush3.bf16.msra.mxu1 %v1507_v36  ;;  %v1527_v36 = vld [vmem:[#allocation7 + $0x140] sm:$0xff]  }
 0x149   :  { %1355 = vmatprep.subr.bf16.mxu1 %v1668_v0 }
 0x14c   :  { %1356 = vmatpush3.bf16.msra.mxu1 %v1508_v37  ;;  %v1528_v37 = vld [vmem:[#allocation7 + $0x148] sm:$0xff]  }
 0x14d   :  { %1357 = vmatprep.subr.bf16.mxu1 %v1668_v0 }
 0x150   :  { %1358 = vmatpush3.bf16.msra.mxu1 %v1509_v46  ;;  %v1536_v46 = vld [vmem:[#allocation7 + $0x188] sm:$0xff]  }
 0x151   :  { %1359 = vmatprep.subr.bf16.mxu1 %v1668_v0 }
 0x154   :  { %1360 = vmatpush3.bf16.msra.mxu1 %v1510_v47  ;;  %v1537_v47 = vld [vmem:[#allocation7 + $0x190] sm:$0xff]  }
 0x155   :  { %1385 = vmatprep.subr.bf16.mxu1 %v1668_v0 }
 0x20a   :  { %v281_v38 = vpop.f32.mrb[0].mxu1 }
 0x20b   :  { %v1337_v39 = vpop.f32.mrb[1].mxu1 }
 0x20c   :  { %v284_v42 = vpop.f32.mrb[2].mxu1  ;;  %v1530_v39 = vld [vmem:[#allocation7 + $0x158] sm:$0xff]  }
 0x20d   :  { %v288_v43 = vpack.c.bf16 %v284_v42, %v281_v38  ;;  %v1338_v44 = vpop.f32.mrb[3].mxu1  ;;  %v1529_v38 = vld [vmem:[#allocation7 + $0x150] sm:$0xff]  }
 0x20e   :  { %v1533_v42 = vld [vmem:[#allocation7 + $0x170] sm:$0xff]   ;;  %v1535_v44 = vld [vmem:[#allocation7 + $0x180] sm:$0xff]  }
 0x20f   :  { %1340 = vmatpush3.bf16.msra.mxu0 %v288_v43  ;;  %v1534_v43 = vld [vmem:[#allocation7 + $0x178] sm:$0xff]  }
 0x210   :  { %1365 = vmatprep.subr.bf16.mxu0 %v1668_v0 }
 0x212   :  { %1342 = vmatmul.mubr.msk.bf16.vlgmr.msra.gmra.mrb[4].mxu0 %vm293_vm1, %v1780_v45 }
 0x213   :  { %1381 = vmatprep.mubr.msk.bf16.mxu0 %vm1669_vm0, %v1668_v0  ;;  %1366 = vmatpush3.bf16.msra.mxu0 %v1511_v48  ;;  %v1538_v48 = vld [vmem:[#allocation7 + $0x198] sm:$0xff]  }
 0x214   :  { %1367 = vmatprep.subr.bf16.mxu0 %v1668_v0 }
 0x217   :  { %1368 = vmatpush3.bf16.msra.mxu0 %v1512_v49  ;;  %v1191_v49 = vld [vmem:[%s1884_s3 + $0x4] ss:$0 sm:$0xff] }
 0x218   :  { %1369 = vmatprep.subr.bf16.mxu0 %v1668_v0 }
 0x21b   :  { %1370 = vmatpush3.bf16.msra.mxu0 %v1513_v50 }
 0x21c   :  { %1371 = vmatprep.subr.bf16.mxu0 %v1668_v0 }
 0x21f   :  { %1372 = vmatpush3.bf16.msra.mxu0 %v1514_v51 }
 0x220   :  { %1373 = vmatprep.subr.bf16.mxu0 %v1668_v0 }
 0x223   :  { %1374 = vmatpush3.bf16.msra.mxu0 %v1515_v60  ;;  %v1542_v60 = vld [vmem:[#allocation7 + $0x1b8] sm:$0xff]  }
 0x224   :  { %1375 = vmatprep.subr.bf16.mxu0 %v1668_v0 }
 0x227   :  { %1376 = vmatpush3.bf16.msra.mxu0 %v1516_v61  ;;  %v1543_v61 = vld [vmem:[#allocation7 + $0x1c0] sm:$0xff]  }
 0x228   :  { %1377 = vmatprep.subr.bf16.mxu0 %v1668_v0 }
 0x22b   :  { %1378 = vmatpush3.bf16.msra.mxu0 %v1517_v62  ;;  %v1544_v62 = vld [vmem:[#allocation7 + $0x1c8] sm:$0xff]  }
 0x22c   :  { %1379 = vmatprep.subr.bf16.mxu0 %v1668_v0 }
 0x22f   :  { %1380 = vmatpush3.bf16.msra.mxu0 %v1518_v63  ;;  %v1545_v63 = vld [vmem:[#allocation7 + $0x1d0] sm:$0xff]  }
 0x230   :  { %1405 = vmatprep.subr.bf16.mxu0 %v1668_v0 }
 0x2e5   :  { %v331_v53 = vpop.f32.mrb[4].mxu0 }
 0x2e6   :  { %v1343_v54 = vpop.f32.mrb[5].mxu0  ;;  %v332_v56 = vadd.f32 %v1163_v52, %v331_v53 }
 0x2e7   :  { %v334_v55 = vpop.f32.mrb[6].mxu0 }
 0x2e8   :  { %v335_v57 = vadd.f32 %v1163_v52, %v334_v55  ;;  %v1344_v58 = vpop.f32.mrb[7].mxu0 }
 0x2e9   :  { %v1540_v58 = vld [vmem:[#allocation7 + $0x1a8] sm:$0xff]  }
 0x2ea   :  { %v356_v59 = vpack.c.bf16 %v335_v57, %v332_v56  ;;  %v1539_v57 = vld [vmem:[#allocation7 + $0x1a0] sm:$0xff]  }
 0x2ec   :  { %1362 = vmatmul.mubr.bf16.vlgmr.msra.gmra.mrb[4].mxu1 %v356_v59  ;;  %v1541_v59 = vld [vmem:[#allocation7 + $0x1b0] sm:$0xff]  }
 0x2ed   :  { %1401 = vmatprep.mubr.msk.bf16.mxu1 %vm1669_vm0, %v1668_v0  ;;  %1386 = vmatpush3.bf16.msra.mxu1 %v1519_v1  ;;  %v1546_v1 = vld [vmem:[#allocation7 + $0x1d8] sm:$0xff]  }
 0x2ee   :  { %1387 = vmatprep.subr.bf16.mxu1 %v1668_v0 }
 0x2f1   :  { %1388 = vmatpush3.bf16.msra.mxu1 %v1520_v2  ;;  %v1547_v2 = vld [vmem:[#allocation7 + $0x1e0] sm:$0xff]  }
 0x2f2   :  { %1389 = vmatprep.subr.bf16.mxu1 %v1668_v0 }
 0x2f5   :  { %1390 = vmatpush3.bf16.msra.mxu1 %v1521_v3  ;;  %v1193_v3 = vld [vmem:[%s1884_s3 + $0x5] ss:$0 sm:$0xff] }
 0x2f6   :  { %1391 = vmatprep.subr.bf16.mxu1 %v1668_v0 }
 0x2f9   :  { %1392 = vmatpush3.bf16.msra.mxu1 %v1522_v4 }
 0x2fa   :  { %1393 = vmatprep.subr.bf16.mxu1 %v1668_v0 }
 0x2fd   :  { %1394 = vmatpush3.bf16.msra.mxu1 %v1523_v5 }
 0x2fe   :  { %1395 = vmatprep.subr.bf16.mxu1 %v1668_v0 }
 0x301   :  { %1396 = vmatpush3.bf16.msra.mxu1 %v1524_v16  ;;  %v1202_v16 = vld [vmem:[%s1884_s3 + $0x6] ss:$0 sm:$0xff] }
 0x302   :  { %1397 = vmatprep.subr.bf16.mxu1 %v1668_v0 }
 0x305   :  { %1398 = vmatpush3.bf16.msra.mxu1 %v1525_v17 }
 0x306   :  { %1399 = vmatprep.subr.bf16.mxu1 %v1668_v0 }
 0x309   :  { %1400 = vmatpush3.bf16.msra.mxu1 %v1526_v18 }
 0x30a   :  { %1431 = vmatprep.subr.bf16.mxu1 %v1668_v0 }
 0x3bf   :  { %v443_v7 = vpop.f32.mrb[4].mxu1 }
 0x3c0   :  { %v444_v8 = vadd.f32 %v1165_v6, %v443_v7  ;;  %v1363_v9 = vpop.f32.mrb[5].mxu1 }
 0x3c1   :  { %v446_v10 = vpop.f32.mrb[6].mxu1 }
 0x3c2   :  { %v447_v11 = vadd.f32 %v1165_v6, %v446_v10  ;;  %v1364_v12 = vpop.f32.mrb[7].mxu1  ;;  %1551 = vtanh.f32 %v444_v8 }
 0x3c4   :  { %1553 = vtanh.f32 %v447_v11 }
 0x3cc   :  { %v1552_v13 = vpop.eup %1551 }
 0x3ce   :  { %v1554_v14 = vpop.eup %1553 }
 0x3cf   :  { %v488_v15 = vpack.c.bf16 %v1554_v14, %v1552_v13  ;;  %v1548_v13 = vld [vmem:[#allocation7 + $0x1e8] sm:$0xff]   ;;  %v1549_v14 = vld [vmem:[#allocation7 + $0x1f0] sm:$0xff]  }
 0x3d1   :  { %1382 = vmatmul.mubr.bf16.vlgmr.msra.gmra.mrb[8].mxu0 %v488_v15  ;;  %v1550_v15 = vld [vmem:[#allocation7 + $0x1f8] sm:$0xff]  }
 0x3d2   :  { %1407 = vmatprep.mubr.msk.bf16.mxu0 %vm1669_vm0, %v1668_v0 }
 0x4a4   :  { %v575_v20 = vpop.f32.mrb[8].mxu0 }
 0x4a5   :  { %v576_v21 = vadd.f32 %v1174_v19, %v575_v20  ;;  %v1383_v22 = vpop.f32.mrb[9].mxu0 }
 0x4a6   :  { %v578_v23 = vpop.f32.mrb[10].mxu0 }
 0x4a7   :  { %v582_v24 = vmul.f32 0.01, %v576_v21  ;;  %v579_v25 = vadd.f32 %v1174_v19, %v578_v23  ;;  %v1384_v26 = vpop.f32.mrb[11].mxu0 }
 0x4a9   :  { %v583_v27 = vmul.f32 0.01, %v579_v25  ;;  %v584_v28 = vmax.f32 %v576_v21, %v582_v24 }
 0x4ab   :  { %v585_v29 = vmax.f32 %v579_v25, %v583_v27 }
 0x4ad   :  { %v586_v30 = vpack.c.bf16 %v585_v29, %v584_v28 }
 0x4af   :  { %1402 = vmatmul.mubr.bf16.vlgmr.msra.gmra.mrb[8].mxu1 %v586_v30 }
 0x4b0   :  { %1447 = vmatprep.mubr.msk.bf16.mxu1 %vm1669_vm0, %v1668_v0  ;;  %1432 = vmatpush3.bf16.msra.mxu1 %v1535_v44 }
 0x4b1   :  { %1433 = vmatprep.subr.bf16.mxu1 %v1668_v0 }
 0x4b4   :  { %1434 = vmatpush3.bf16.msra.mxu1 %v1536_v46 }
 0x4b5   :  { %1435 = vmatprep.subr.bf16.mxu1 %v1668_v0 }
 0x4b8   :  { %1436 = vmatpush3.bf16.msra.mxu1 %v1537_v47 }
 0x4b9   :  { %1437 = vmatprep.subr.bf16.mxu1 %v1668_v0 }
 0x4bc   :  { %1438 = vmatpush3.bf16.msra.mxu1 %v1538_v48 }
 0x4bd   :  { %1439 = vmatprep.subr.bf16.mxu1 %v1668_v0 }
 0x4c0   :  { %1440 = vmatpush3.bf16.msra.mxu1 %v1539_v57 }
 0x4c1   :  { %1441 = vmatprep.subr.bf16.mxu1 %v1668_v0 }
 0x4c4   :  { %1442 = vmatpush3.bf16.msra.mxu1 %v1540_v58 }
 0x4c5   :  { %1443 = vmatprep.subr.bf16.mxu1 %v1668_v0 }
 0x4c8   :  { %1444 = vmatpush3.bf16.msra.mxu1 %v1541_v59 }
 0x4c9   :  { %1445 = vmatprep.subr.bf16.mxu1 %v1668_v0 }
 0x4cc   :  { %1446 = vmatpush3.bf16.msra.mxu1 %v1542_v60 }
 0x4cd   :  { %1471 = vmatprep.subr.bf16.mxu1 %v1668_v0 }
 0x582   :  { %v669_v31 = vpop.f32.mrb[8].mxu1 }
 0x583   :  { %v1403_v32 = vpop.f32.mrb[9].mxu1 }
 0x584   :  { %v672_v33 = vpop.f32.mrb[10].mxu1  ;;  %v1219_v32 = vld [vmem:[%s1884_s3 + $0x7] ss:$0 sm:$0xff]  ;;  %s1670_s3 = smov [#allocation8]  }
 0x585   :  { %v676_v34 = vpack.c.bf16 %v672_v33, %v669_v31  ;;  %v1404_v35 = vpop.f32.mrb[11].mxu1  ;;  %s1133_s17 = sshll.u32 %s1670_s3, 4  ;;  %s1134_s17 = int_to_ptr.vmem [resolvable:$true] %s1133_s17 }
 0x586   :  { %s1633_s19 = scalar_lea.vmem %s1134_s17, 256  ;;  %p1638_p11 = scmp.lt.s32.totalorder %s1134_s17, %s1134_s17 }
 0x587   :  { %1406 = vmatpush3.bf16.msra.mxu0 %v676_v34  ;;  %p1634_p10 = scmp.ne.s32.totalorder %s1134_s17, %s1633_s19  ;;  %p1639_p12 = scmp.lt.s32.totalorder %s1633_s19, %s1633_s19 }
 0x588   :  { %1411 = vmatprep.subr.bf16.mxu0 %v1668_v0 }
 0x589   :  { %p1640_p13 = por %p1639_p12, %p1638_p11 }
 0x58a   :  { %1408 = vmatmul.mubr.msk.bf16.vlgmr.msra.gmra.mrb[12].mxu0 %vm293_vm1, %v1780_v45 }
 0x58b   :  { %1412 = vmatpush3.bf16.msra.mxu0 %v1527_v36  ;;  %1427 = vmatprep.mubr.msk.bf16.mxu0 %vm1669_vm0, %v1668_v0  ;;  %p1641_p0 = pnand %p1640_p13, %p1634_p10 }
 0x58c   :  { %1413 = vmatprep.subr.bf16.mxu0 %v1668_v0 }
 0x58f   :  { %1414 = vmatpush3.bf16.msra.mxu0 %v1528_v37 }
 0x590   :  { %1415 = vmatprep.subr.bf16.mxu0 %v1668_v0 }
 0x593   :  { %1416 = vmatpush3.bf16.msra.mxu0 %v1529_v38 }
 0x594   :  { %1417 = vmatprep.subr.bf16.mxu0 %v1668_v0 }
 0x597   :  { %1418 = vmatpush3.bf16.msra.mxu0 %v1530_v39 }
 0x598   :  { %1419 = vmatprep.subr.bf16.mxu0 %v1668_v0 }
 0x59b   :  { %1420 = vmatpush3.bf16.msra.mxu0 %v1531_v40 }
 0x59c   :  { %1421 = vmatprep.subr.bf16.mxu0 %v1668_v0 }
 0x59f   :  { %1422 = vmatpush3.bf16.msra.mxu0 %v1532_v41 }
 0x5a0   :  { %1423 = vmatprep.subr.bf16.mxu0 %v1668_v0 }
 0x5a3   :  { %1424 = vmatpush3.bf16.msra.mxu0 %v1533_v42 }
 0x5a4   :  { %1425 = vmatprep.subr.bf16.mxu0 %v1668_v0 }
 0x5a7   :  { %1426 = vmatpush3.bf16.msra.mxu0 %v1534_v43 }
 0x5a8   :  { %1451 = vmatprep.subr.bf16.mxu0 %v1668_v0 }
 0x65d   :  { %v715_v50 = vpop.f32.mrb[12].mxu0 }
 0x65e   :  { %v1409_v51 = vpop.f32.mrb[13].mxu0  ;;  %v716_v53 = vadd.f32 %v1191_v49, %v715_v50 }
 0x65f   :  { %v718_v52 = vpop.f32.mrb[14].mxu0 }
 0x660   :  { %v719_v54 = vadd.f32 %v1191_v49, %v718_v52  ;;  %v1410_v55 = vpop.f32.mrb[15].mxu0 }
 0x662   :  { %v740_v56 = vpack.c.bf16 %v719_v54, %v716_v53 }
 0x664   :  { %1428 = vmatmul.mubr.bf16.vlgmr.msra.gmra.mrb[16].mxu0 %v740_v56 }
 0x665   :  { %1467 = vmatprep.mubr.msk.bf16.mxu0 %vm1669_vm0, %v1668_v0  ;;  %1452 = vmatpush3.bf16.msra.mxu0 %v1543_v61 }
 0x666   :  { %1453 = vmatprep.subr.bf16.mxu0 %v1668_v0 }
 0x669   :  { %1454 = vmatpush3.bf16.msra.mxu0 %v1544_v62 }
 0x66a   :  { %1455 = vmatprep.subr.bf16.mxu0 %v1668_v0 }
 0x66d   :  { %1456 = vmatpush3.bf16.msra.mxu0 %v1545_v63 }
 0x66e   :  { %1457 = vmatprep.subr.bf16.mxu0 %v1668_v0 }
 0x671   :  { %1458 = vmatpush3.bf16.msra.mxu0 %v1546_v1 }
 0x672   :  { %1459 = vmatprep.subr.bf16.mxu0 %v1668_v0 }
 0x675   :  { %1460 = vmatpush3.bf16.msra.mxu0 %v1547_v2 }
 0x676   :  { %1461 = vmatprep.subr.bf16.mxu0 %v1668_v0 }
 0x679   :  { %1462 = vmatpush3.bf16.msra.mxu0 %v1548_v13 }
 0x67a   :  { %1463 = vmatprep.subr.bf16.mxu0 %v1668_v0 }
 0x67d   :  { %1464 = vmatpush3.bf16.msra.mxu0 %v1549_v14 }
 0x67e   :  { %1465 = vmatprep.subr.bf16.mxu0 %v1668_v0 }
 0x681   :  { %1466 = vmatpush3.bf16.msra.mxu0 %v1550_v15 }
 0x737   :  { %v827_v4 = vpop.f32.mrb[16].mxu0 }
 0x738   :  { %v828_v5 = vadd.f32 %v1193_v3, %v827_v4  ;;  %v1429_v6 = vpop.f32.mrb[17].mxu0 }
 0x739   :  { %v830_v7 = vpop.f32.mrb[18].mxu0 }
 0x73a   :  { %v831_v8 = vadd.f32 %v1193_v3, %v830_v7  ;;  %v1430_v9 = vpop.f32.mrb[19].mxu0  ;;  %1555 = vtanh.f32 %v828_v5 }
 0x73c   :  { %1557 = vtanh.f32 %v831_v8 }
 0x744   :  { %v1556_v10 = vpop.eup %1555 }
 0x746   :  { %v1558_v11 = vpop.eup %1557 }
 0x747   :  { %v872_v12 = vpack.c.bf16 %v1558_v11, %v1556_v10 }
 0x749   :  { %1448 = vmatmul.mubr.bf16.vlgmr.msra.gmra.mrb[12].mxu1 %v872_v12 }
 0x74a   :  { %1473 = vmatprep.mubr.msk.bf16.mxu1 %vm1669_vm0, %v1668_v0 }
 0x81c   :  { %v959_v17 = vpop.f32.mrb[12].mxu1 }
 0x81d   :  { %v960_v18 = vadd.f32 %v1202_v16, %v959_v17  ;;  %v1449_v19 = vpop.f32.mrb[13].mxu1 }
 0x81e   :  { %v962_v20 = vpop.f32.mrb[14].mxu1 }
 0x81f   :  { %v966_v21 = vmul.f32 0.01, %v960_v18  ;;  %v963_v22 = vadd.f32 %v1202_v16, %v962_v20  ;;  %v1450_v23 = vpop.f32.mrb[15].mxu1 }
 0x821   :  { %v967_v24 = vmul.f32 0.01, %v963_v22  ;;  %v968_v25 = vmax.f32 %v960_v18, %v966_v21 }
 0x823   :  { %v969_v26 = vmax.f32 %v963_v22, %v967_v24 }
 0x825   :  { %v970_v27 = vpack.c.bf16 %v969_v26, %v968_v25 }
 0x827   :  { %1468 = vmatmul.mubr.bf16.vlgmr.msra.gmra.mrb[20].mxu0 %v970_v27 }
 0x8fa   :  { %v1053_v28 = vpop.f32.mrb[20].mxu0 }
 0x8fb   :  { %v1469_v0 = vpop.f32.mrb[21].mxu0 }
 0x8fc   :  { %v1056_v29 = vpop.f32.mrb[22].mxu0 }
 0x8fd   :  { %v1060_v30 = vpack.c.bf16 %v1056_v29, %v1053_v28  ;;  %v1470_v31 = vpop.f32.mrb[23].mxu0 }
 0x8ff   :  { %1472 = vmatpush3.bf16.msra.mxu1 %v1060_v30 }
 0x902   :  { %1474 = vmatmul.mubr.msk.bf16.vlgmr.msra.gmra.mrb[16].mxu1 %vm293_vm1, %v1780_v45 }
 0x9d5   :  { %v1099_v33 = vpop.f32.mrb[16].mxu1 }
 0x9d6   :  { %v1100_v34 = vadd.f32 %v1219_v32, %v1099_v33  ;;  %v1475_v35 = vpop.f32.mrb[17].mxu1 }
 0x9d7   :  { %v1102_v36 = vpop.f32.mrb[18].mxu1 }
 0x9d8   :  { %1106 = vmax.xlane.f32.xlu0 %v1100_v34  ;;  %v1476_v37 = vpop.f32.mrb[19].mxu1  ;;  %v1103_v38 = vadd.f32 %v1219_v32, %v1102_v36 }
 0x9dc   :  { %1108 = vmax.xlane.f32.xlu0 %v1103_v38 }
 0xa65   :  { %v1107_v39 = vpop.xlane.xlu0 %1106 }
 0xa66   :  { %v1110_v40 = vsub.f32 %v1100_v34, %v1107_v39 }
 0xa68   :  { %v1112_v41 = vmul.f32 1.442695, %v1110_v40 }
 0xa69   :  { %v1109_v42 = vpop.xlane.xlu0 %1108 }
 0xa6a   :  { %v1111_v43 = vsub.f32 %v1103_v38, %v1109_v42  ;;  %1559 = vpow2.f32 %v1112_v41 }
 0xa6c   :  { %v1114_v44 = vmul.f32 1.442695, %v1111_v43 }
 0xa6e   :  { %1561 = vpow2.f32 %v1114_v44 }
 0xa74   :  { %v1560_v45 = vpop.eup %1559 }
 0xa75   :  { %1116 = vadd.xlane.f32.xlu1 %v1560_v45 }
 0xa78   :  { %v1562_v46 = vpop.eup %1561 }
 0xa79   :  { %1118 = vadd.xlane.f32.xlu1 %v1562_v46 }
 0xb02   :  { %v1117_v47 = vpop.xlane.xlu1 %1116 }
 0xb03   :  { %1563 = vlog2.f32 %v1117_v47 }
 0xb06   :  { %v1119_v48 = vpop.xlane.xlu1 %1118 }
 0xb07   :  { %1565 = vlog2.f32 %v1119_v48 }
 0xb0d   :  { %v1564_v49 = vpop.eup %1563 }
 0xb0e   :  { %v1121_v50 = vmul.f32 0.6931472, %v1564_v49 }
 0xb10   :  { %v1124_v51 = vsub.f32 %v1110_v40, %v1121_v50 }
 0xb11   :  { %v1566_v52 = vpop.eup %1565 }
 0xb12   :  { %1126 = vst [vmem:[#allocation8] sm:$0xff] %v1124_v51  ;;  %v1123_v53 = vmul.f32 0.6931472, %v1566_v52 }
 0xb14   :  { %v1125_v54 = vsub.f32 %v1111_v43, %v1123_v53 }
 0xb16   :  { %1127 = vst [vmem:[#allocation8 + $0x8] sm:$0xff] %v1125_v54 }
 0xb17   :  { %1644 = shalt.err (!%p1641_p0)
}
 0xb18   :  { %s1645_s22 = scalar_lea.hbm %s1885_s4, 256 }
 0xb19   :  { %p1646_p1 = scmp.ne.s32.totalorder %s1885_s4, %s1645_s22  ;;  %p1649_p2 = scmp.lt.u32.totalorder %s1645_s22, %s1885_s4 }
 0xb1b   :  { %p1651_p3 = pnand %p1649_p2, %p1646_p1 }
 0xb1d   :  { %1654 = shalt.err (!%p1651_p3)
}
 0xb1e   :  { %1139 = dma.vmem_to_hbm [thread:$0]  %s1134_s17, 256, %s1885_s4, [#allocation4], %s1663_s27, %s1663_s27, %s1664_s28  }
 0xb1f   :  { %1659 = dma.done.wait [#allocation4], 256  }
 0xb20   :  { %1660 = vsyncadd [#allocation4], 4294967040 }
 0xb21   :  { %1143 = vsyncpa [#allocation3], 1 }
 0xb22   :  { %1144 = vsyncpa [#allocation6], 1 }
 0xb23   :  { %1145 = vsyncpa [#allocation4], 1 }

</bundles_post_ra>
